<compile_context>
chip_gen: v7x
topology: tpu7x:2x2x1
jax: 0.10.0
libtpu: 0.0.40
codegen_flags: <defaults>
</compile_context>

<pallas_src>
import math

import jax
import jax.numpy as jnp
from jax.experimental import pallas as pl
from jax.experimental.pallas import tpu as pltpu

LEAKY_SLOPE = 0.01      # nn.LeakyReLU default
BN_EPS = 1e-5           # nn.BatchNorm1d default
MAX_TILE_D = 1024       # big tiles amortize ~0.35 us/grid-step overhead
MIN_TILE_D = 128        # lane alignment


def _leaky(x):
    return jnp.where(x > 0, x, LEAKY_SLOPE * x)


# ----------------------------- fused Pallas kernel ---------------------------

def make_sparsity_kernel(n_hidden):
    """Fused MLP kernel. Ref order: e_ref, (w_i, b_i)*n_hidden, wl_col, bl, o_ref.

    e_ref:  (TILE_D, M) bf16 tile of the embedding matrix (D on sublanes).
    w_i:    (out_i, in_i) bf16, eval-mode BN scale folded in, zero-padded to x8.
    b_i:    (out_i, 1)    f32.
    wl_col: (in_last, 1)  f32 final Linear weight as a column.
    bl:     (1, 1)        f32.
    o_ref:  (1, TILE_D)   f32 lane-dense sigmoid outputs.
    """
    def kernel(*refs):
        e_ref = refs[0]
        o_ref = refs[-1]

        # Layer 0: contract the shared M axis of (out0, M) x (TILE_D, M),
        # which moves D onto the 128-lane axis of the activations.
        w0 = refs[1][...]                                        # bf16 (out0, M)
        b0 = refs[2][...]                                        # f32  (out0, 1)
        h = jax.lax.dot_general(
            w0, e_ref[...],
            dimension_numbers=(((1,), (1,)), ((), ())),
            preferred_element_type=jnp.float32)                  # (out0, TILE_D) f32
        h = _leaky(h + b0)

        idx = 3
        for _ in range(n_hidden - 1):
            w = refs[idx][...]                                   # bf16 (out, in)
            b = refs[idx + 1][...]                               # f32  (out, 1)
            idx += 2
            h = _leaky(jnp.dot(w, h.astype(jnp.bfloat16),
                               preferred_element_type=jnp.float32) + b)

        # Final Linear(dim, 1): VPU multiply + sublane (XLU) reduction — keeps
        # the 1-row matmul off the MXU push/drain path.
        wl = refs[idx][...]                                      # f32 (in_last, 1)
        bl = refs[idx + 1][...]                                  # f32 (1, 1)
        y = jnp.sum(wl * h, axis=0, keepdims=True) + bl          # (1, TILE_D)
        o_ref[...] = jax.nn.sigmoid(y)                           # lane-dense
    return kernel


def _pick_tile_d(D):
    """Largest lane tile <= MAX_TILE_D that still leaves >= 2 grid steps (v7x)."""
    if D <= 2 * MIN_TILE_D:
        return MIN_TILE_D
    half = pl.cdiv(pl.cdiv(D, 2), MIN_TILE_D) * MIN_TILE_D
    return min(MAX_TILE_D, half)


def sparsity_forward(E, params):
    """E: (D, M) embedding matrix -> sparsity values (D,) in [0, 1]."""
    D, M = E.shape
    n_hidden = len(params["hidden"])
    if E.dtype != jnp.bfloat16:
        # One-time cast; in practice store the embedding buffer pre-cast to bf16.
        E = E.astype(jnp.bfloat16)

    tile_d = _pick_tile_d(D)
    n_tiles = pl.cdiv(D, tile_d)   # ragged last tile: OOB lanes sliced off below

    def _full(a):  # tiny weight/bias: full-array block, same for every tile
        return pl.BlockSpec(a.shape, lambda i: (0, 0))

    flat_args = [E]
    in_specs = [pl.BlockSpec((tile_d, M), lambda i: (i, 0))]
    for layer in params["hidden"]:
        flat_args += [layer["w_folded"], layer["b_folded"]]
        in_specs += [_full(layer["w_folded"]), _full(layer["b_folded"])]
    last = params["last"]
    flat_args += [last["w_col"], last["b_col"]]
    in_specs += [_full(last["w_col"]), _full(last["b_col"])]

    out = pl.pallas_call(
        make_sparsity_kernel(n_hidden),
        out_shape=jax.ShapeDtypeStruct((1, D), jnp.float32),
        grid=(n_tiles,),
        in_specs=in_specs,
        out_specs=pl.BlockSpec((1, tile_d), lambda i: (0, i)),
        compiler_params=pltpu.CompilerParams(
            dimension_semantics=("parallel",),
            vmem_limit_bytes=32 * 1024 * 1024),
    )(*flat_args)
    return out[0]                                                # (D,)


# ------------------------------ parameter init --------------------------------

def _round_up8(n):
    return ((n + 7) // 8) * 8


def _init_linear(key, fan_in, fan_out):
    """PyTorch nn.Linear default init: U(-1/sqrt(fan_in), 1/sqrt(fan_in))."""
    kw, kb = jax.random.split(key)
    bound = 1.0 / math.sqrt(fan_in)
    w = jax.random.uniform(kw, (fan_out, fan_in), jnp.float32, -bound, bound)
    b = jax.random.uniform(kb, (fan_out,), jnp.float32, -bound, bound)
    return w, b


def init_params(key, embedding_dim, wpn_layers):
    assert len(wpn_layers) >= 1
    keys = jax.random.split(key, len(wpn_layers) + 1)
    scale = 1.0 / math.sqrt(1.0 + BN_EPS)   # eval-mode BN, fresh stats; shift = 0
    hidden = []
    prev_real, prev_pad = embedding_dim, embedding_dim
    for k, dim in zip(keys[:-1], wpn_layers):
        w, b = _init_linear(k, prev_real, dim)
        dim_pad = _round_up8(dim)            # sublane-aligned hidden width
        wf = jnp.zeros((dim_pad, prev_pad), jnp.float32)
        wf = wf.at[:dim, :prev_real].set(scale * w)          # BN scale folded in
        bf = jnp.zeros((dim_pad, 1), jnp.float32)
        bf = bf.at[:dim, 0].set(scale * b)
        hidden.append({
            "w": w, "b": b,                                  # raw (for reference)
            "w_folded": wf.astype(jnp.bfloat16),             # MXU-native dtype
            "b_folded": bf,                                  # (out_pad, 1) f32
        })
        prev_real, prev_pad = dim, dim_pad
    wl, bl = _init_linear(keys[-1], prev_real, 1)            # final Linear(dim, 1)
    w_col = jnp.zeros((prev_pad, 1), jnp.float32).at[:prev_real, 0].set(wl[0])
    last = {"w": wl, "b": bl, "w_col": w_col, "b_col": bl.reshape(1, 1)}
    return {"hidden": hidden, "last": last}


# ------------------------------ pure-JAX reference ----------------------------

def _ref_forward(E, params):
    """Unfolded, unpadded f32 math for numerical validation."""
    scale = 1.0 / math.sqrt(1.0 + BN_EPS)
    h = E
    for l in params["hidden"]:
        h = _leaky(h @ l["w"].T + l["b"]) * scale            # Linear + LReLU + BN_eval
    out = jax.nn.sigmoid(h @ params["last"]["w"].T + params["last"]["b"])
    return out[:, 0]


# ----------------------------------- main --------------------------------------

if __name__ == "__main__":
    D, M = 300, 32                       # num_features x embedding size (ragged D tile)
    wpn_layers = (64, 32)

    key = jax.random.PRNGKey(0)
    k_e, k_p = jax.random.split(key)
    E = jax.random.normal(k_e, (D, M), jnp.float32)
    params = init_params(k_p, M, wpn_layers)

    s = sparsity_forward(E, params)
    jax.block_until_ready(s)

    s_ref = _ref_forward(E, params)
    assert s.shape == (D,)
    assert bool(jnp.all((s >= 0.0) & (s <= 1.0)))
    # bf16 MXU operands -> loosened tolerance vs. the f32 reference.
    assert jnp.allclose(s, s_ref, atol=2e-2, rtol=0.0), float(jnp.max(jnp.abs(s - s_ref)))

    print("KERNEL_OK")
</pallas_src>

<mosaic_0001>
module attributes {stable_mosaic.version = 11 : i64} {
  func.func @kernel(%arg0: i32, %arg1: memref<256x32xbf16, #tpu.memory_space<vmem>>, %arg2: memref<64x32xbf16, #tpu.memory_space<vmem>>, %arg3: memref<64x1xf32, #tpu.memory_space<vmem>>, %arg4: memref<32x64xbf16, #tpu.memory_space<vmem>>, %arg5: memref<32x1xf32, #tpu.memory_space<vmem>>, %arg6: memref<32x1xf32, #tpu.memory_space<vmem>>, %arg7: memref<1x1xf32, #tpu.memory_space<vmem>>, %arg8: memref<1x256xf32, #tpu.memory_space<vmem>>) attributes {dimension_semantics = [#tpu.dimension_semantics<parallel>], iteration_bounds = array<i64: 2>, scalar_prefetch = 0 : i64, scratch_operands = 0 : i64, tpu.core_type = #tpu.core_type<tc>, window_params = [{transform_indices = @transform_0, window_bounds = array<i64: 256, 32>}, {pipeline_mode = #tpu.pipeline_mode<synchronous>, transform_indices = @transform_1, window_bounds = array<i64: 64, 32>}, {pipeline_mode = #tpu.pipeline_mode<synchronous>, transform_indices = @transform_2, window_bounds = array<i64: 64, 1>}, {pipeline_mode = #tpu.pipeline_mode<synchronous>, transform_indices = @transform_3, window_bounds = array<i64: 32, 64>}, {pipeline_mode = #tpu.pipeline_mode<synchronous>, transform_indices = @transform_4, window_bounds = array<i64: 32, 1>}, {pipeline_mode = #tpu.pipeline_mode<synchronous>, transform_indices = @transform_5, window_bounds = array<i64: 32, 1>}, {pipeline_mode = #tpu.pipeline_mode<synchronous>, transform_indices = @transform_6, window_bounds = array<i64: 1, 1>}, {transform_indices = @transform_7, window_bounds = array<i64: 1, 256>}]} {
    %c0 = arith.constant 0 : index
    %c0_0 = arith.constant 0 : index
    %0 = vector.load %arg2[%c0, %c0_0] : memref<64x32xbf16, #tpu.memory_space<vmem>>, vector<64x32xbf16>
    %c0_1 = arith.constant 0 : index
    %c0_2 = arith.constant 0 : index
    %1 = vector.load %arg3[%c0_1, %c0_2] : memref<64x1xf32, #tpu.memory_space<vmem>>, vector<64x1xf32>
    %c0_3 = arith.constant 0 : index
    %c0_4 = arith.constant 0 : index
    %2 = vector.load %arg1[%c0_3, %c0_4] : memref<256x32xbf16, #tpu.memory_space<vmem>>, vector<256x32xbf16>
    %cst = arith.constant dense<0.000000e+00> : vector<64x256xf32>
    %3 = tpu.matmul %0, %2, %cst {dimension_numbers = #tpu.dot_dimension_numbers<[1], [1], [0], [0], [0, 0, 1, 0], [], []>} : vector<64x32xbf16>, vector<256x32xbf16>, vector<64x256xf32> -> vector<64x256xf32>
    %4 = vector.broadcast %1 : vector<64x1xf32> to vector<64x256xf32>
    %5 = arith.addf %3, %4 : vector<64x256xf32>
    %cst_5 = arith.constant 0.000000e+00 : f32
    %6 = vector.broadcast %cst_5 : f32 to vector<64x256xf32>
    %7 = arith.cmpf ogt, %5, %6 : vector<64x256xf32>
    %cst_6 = arith.constant 0.00999999977 : f32
    %8 = vector.broadcast %cst_6 : f32 to vector<64x256xf32>
    %9 = arith.mulf %8, %5 : vector<64x256xf32>
    %10 = arith.select %7, %5, %9 : vector<64x256xi1>, vector<64x256xf32>
    %c0_7 = arith.constant 0 : index
    %c0_8 = arith.constant 0 : index
    %11 = vector.load %arg4[%c0_7, %c0_8] : memref<32x64xbf16, #tpu.memory_space<vmem>>, vector<32x64xbf16>
    %c0_9 = arith.constant 0 : index
    %c0_10 = arith.constant 0 : index
    %12 = vector.load %arg5[%c0_9, %c0_10] : memref<32x1xf32, #tpu.memory_space<vmem>>, vector<32x1xf32>
    %13 = arith.truncf %10 : vector<64x256xf32> to vector<64x256xbf16>
    %cst_11 = arith.constant dense<0.000000e+00> : vector<32x256xf32>
    %14 = tpu.matmul %11, %13, %cst_11 {dimension_numbers = #tpu.dot_dimension_numbers<[1], [0], [0], [1], [0, 0, 1, 1], [], []>} : vector<32x64xbf16>, vector<64x256xbf16>, vector<32x256xf32> -> vector<32x256xf32>
    %15 = vector.broadcast %12 : vector<32x1xf32> to vector<32x256xf32>
    %16 = arith.addf %14, %15 : vector<32x256xf32>
    %cst_12 = arith.constant 0.000000e+00 : f32
    %17 = vector.broadcast %cst_12 : f32 to vector<32x256xf32>
    %18 = arith.cmpf ogt, %16, %17 : vector<32x256xf32>
    %cst_13 = arith.constant 0.00999999977 : f32
    %19 = vector.broadcast %cst_13 : f32 to vector<32x256xf32>
    %20 = arith.mulf %19, %16 : vector<32x256xf32>
    %21 = arith.select %18, %16, %20 : vector<32x256xi1>, vector<32x256xf32>
    %c0_14 = arith.constant 0 : index
    %c0_15 = arith.constant 0 : index
    %22 = vector.load %arg6[%c0_14, %c0_15] : memref<32x1xf32, #tpu.memory_space<vmem>>, vector<32x1xf32>
    %c0_16 = arith.constant 0 : index
    %c0_17 = arith.constant 0 : index
    %23 = vector.load %arg7[%c0_16, %c0_17] : memref<1x1xf32, #tpu.memory_space<vmem>>, vector<1x1xf32>
    %24 = vector.broadcast %22 : vector<32x1xf32> to vector<32x256xf32>
    %25 = arith.mulf %24, %21 : vector<32x256xf32>
    %cst_18 = arith.constant dense<0.000000e+00> : vector<256xf32>
    %26 = vector.multi_reduction <add>, %25, %cst_18 [0] : vector<32x256xf32> to vector<256xf32>
    %27 = vector.shape_cast %26 : vector<256xf32> to vector<1x256xf32>
    %28 = vector.broadcast %23 : vector<1x1xf32> to vector<1x256xf32>
    %29 = arith.addf %27, %28 : vector<1x256xf32>
    %30 = arith.negf %29 : vector<1x256xf32>
    %31 = math.exp %30 : vector<1x256xf32>
    %cst_19 = arith.constant 1.000000e+00 : f32
    %32 = vector.broadcast %cst_19 : f32 to vector<1x256xf32>
    %33 = arith.addf %32, %31 : vector<1x256xf32>
    %34 = arith.divf %32, %33 : vector<1x256xf32>
    %c0_20 = arith.constant 0 : index
    %c0_21 = arith.constant 0 : index
    %35 = vector.load %arg8[%c0_20, %c0_21] : memref<1x256xf32, #tpu.memory_space<vmem>>, vector<1x256xf32>
    tpu.vector_store %arg8[%c0_20, %c0_21], %34 {strides = array<i32>} : memref<1x256xf32, #tpu.memory_space<vmem>>, vector<1x256xf32>,
    return
  }
  func.func @transform_0(%arg0: i32) -> (i32, i32) {
    %c0_i32 = arith.constant 0 : i32
    %c0_i32_0 = arith.constant 0 : i32
    return %arg0, %c0_i32 : i32, i32
  }
  func.func @transform_1(%arg0: i32) -> (i32, i32) {
    %c0_i32 = arith.constant 0 : i32
    %c0_i32_0 = arith.constant 0 : i32
    %c0_i32_1 = arith.constant 0 : i32
    return %c0_i32, %c0_i32_0 : i32, i32
  }
  func.func @transform_2(%arg0: i32) -> (i32, i32) {
    %c0_i32 = arith.constant 0 : i32
    %c0_i32_0 = arith.constant 0 : i32
    %c0_i32_1 = arith.constant 0 : i32
    return %c0_i32, %c0_i32_0 : i32, i32
  }
  func.func @transform_3(%arg0: i32) -> (i32, i32) {
    %c0_i32 = arith.constant 0 : i32
    %c0_i32_0 = arith.constant 0 : i32
    %c0_i32_1 = arith.constant 0 : i32
    return %c0_i32, %c0_i32_0 : i32, i32
  }
  func.func @transform_4(%arg0: i32) -> (i32, i32) {
    %c0_i32 = arith.constant 0 : i32
    %c0_i32_0 = arith.constant 0 : i32
    %c0_i32_1 = arith.constant 0 : i32
    return %c0_i32, %c0_i32_0 : i32, i32
  }
  func.func @transform_5(%arg0: i32) -> (i32, i32) {
    %c0_i32 = arith.constant 0 : i32
    %c0_i32_0 = arith.constant 0 : i32
    %c0_i32_1 = arith.constant 0 : i32
    return %c0_i32, %c0_i32_0 : i32, i32
  }
  func.func @transform_6(%arg0: i32) -> (i32, i32) {
    %c0_i32 = arith.constant 0 : i32
    %c0_i32_0 = arith.constant 0 : i32
    %c0_i32_1 = arith.constant 0 : i32
    return %c0_i32, %c0_i32_0 : i32, i32
  }
  func.func @transform_7(%arg0: i32) -> (i32, i32) {
    %c0_i32 = arith.constant 0 : i32
    %c0_i32_0 = arith.constant 0 : i32
    return %c0_i32, %arg0 : i32, i32
  }
}

</mosaic_0001>

<bundles_post_ra>
// kernel: tpu_custom_call.1
= control target key start
LH: loop header
LB: loop body
LE: loop exit
PB: predicated region body
PF: predicated region fallthrough
CT: control target
= control target key end

     0   :  { %s1473_s0 = inlined_call_operand.vmem [shape: bf16[300,32], index: 0, kind: input, shape index: {}]   ;;  %s1474_s1 = inlined_call_operand.vmem [shape: bf16[64,32], index: 1, kind: input, shape index: {}]   ;;  %s1475_s2 = inlined_call_operand.vmem [shape: f32[64,1], index: 2, kind: input, shape index: {}]   ;;  %s1476_s3 = inlined_call_operand.vmem [shape: bf16[32,64], index: 3, kind: input, shape index: {}]   ;;  %s1477_s4 = inlined_call_operand.vmem [shape: f32[32,1], index: 4, kind: input, shape index: {}]   ;;  %s1478_s5 = inlined_call_operand.vmem [shape: f32[32,1], index: 5, kind: input, shape index: {}]   ;;  %s1479_s6 = inlined_call_operand.<no memory space> [shape: f32[1,1], index: 6, kind: input, shape index: {}]   ;;  %s1480_s7 = inlined_call_operand.hbm [shape: f32[1,300], index: 7, kind: output, shape index: {}]  }
   0x1   :  { %v12_v0 = vstv %s1479_s6 }
   0x2   :  { %13 = vst [vmem:[#allocation2] sm:$0x1] %v12_v0 }
   0x3   :  { %14 = vsyncpa [#allocation4], 0 }
   0x4   :  { %16 = vsyncpa [#allocation4 + $0x1], 0  ;;  %s1242_s26 = smov 0   ;;  %s1244_s27 = smov 0  }
   0x5   :  { %s1246_s28 = smov 0   ;;  %s1248_s29 = smov 0  }
   0x6 LB: > { %s1263_s6 = sadd.s32 4294967295, %s1194_s29   ;;  %s983_s30 = sadd.s32 4294967294, %s1194_s29   ;;  %s1194_s29 = sphi %s1248_s29, %s1486_s29   ;;  %s1190_s28 = sphi %s1246_s28, %s1485_s28   ;;  %s1186_s27 = sphi %s1244_s27, %s1484_s27   ;;  %s1182_s26 = sphi %s1242_s26, %s1483_s26  }
   0x7   : > { %s1267_s8 = sadd.s32 1, %s1194_s29   ;;  %s181_s9 = sadd.s32 1, %s1190_s28 }
   0x8   : > { %s178_s10 = ssub.s32 %s1194_s29, %s1267_s8  ;;  %p191_p0 = scmp.ne.s32.totalorder %s1190_s28, %s1186_s27 }
   0x9   : > { %p179_p1 = scmp.eq.s32.totalorder %s178_s10, 0  ;;  %p192_p2 = scmp.eq.s32.totalorder %s1263_s6, 1 }
   0xa   : > { %p197_p3 = scmp.ne.s32.totalorder %s1186_s27, %s1182_s26  ;;  %p198_p4 = scmp.eq.s32.totalorder %s983_s30, 1 }
   0xb   : > { %s1278_s11 = scalar_select %p179_p1, %s1190_s28, %s181_s9  }
   0xc   : > { %p1280_p5 = por %p192_p2, %p191_p0  ;;  %p1284_p6 = por %p198_p4, %p197_p3 }
   0xd   : > { %p986_p7 = scmp.ge.s32.totalorder %s1194_s29, 1  ;;  %p251_p8 = scmp.lt.s32.totalorder %s1194_s29, 3 }
   0xf   : > { %p252_p9 = pnand %p986_p7, %p251_p8 }
  0x10   : > { %s1291_s14 = sshll.u32 (!%p252_p9), %s1263_s6, 5  ;;  %v1297_v1 = vld [vmem:[%s1474_s1] sm:$0xff] (!%p252_p9)   ;;  %vm495_vm0 = vcmask (!%p252_p9), 261120   ;;  %v1196_v2 = vmov (!%p252_p9), 0   ;;  %v317_v4 = vld [vmem:[%s1475_s2 + $0x10] sm:$0xff] (!%p252_p9)  ;;  %v316_v5 = vld [vmem:[%s1475_s2 + $0x8] sm:$0xff] (!%p252_p9) }
  0x11   : > { %255 = sbr.rel (%p252_p9) target bundleno = 650 (0x28a), region = 48  ;;  %p292_p10 = scmp.lt.s32.totalorder (!%p252_p9), %s1291_s14, 37  ;;  %1044 = vmatprep.mubr.msk.bf16.mxu0 (!%p252_p9), %vm495_vm0, %v1297_v1  ;;  %1100 = vset.pattern.permute.xlu0 (!%p252_p9), %v1196_v2  ;;  %v315_v3 = vld [vmem:[%s1475_s2] sm:$0xff] (!%p252_p9)  ;;  %v318_v6 = vld [vmem:[%s1475_s2 + $0x18] sm:$0xff] (!%p252_p9)  ;;  %v320_v12 = vld [vmem:[%s1475_s2 + $0x28] sm:$0xff] (!%p252_p9) }
  0x12   : > { %1101 = vset.pattern.permute.xlu1 (!%p252_p9), %v1196_v2  ;;  %762 = vmatprep.mubr.bf16.mxu1 (!%p252_p9), %v1196_v2  ;;  %v319_v11 = vld [vmem:[%s1475_s2 + $0x20] sm:$0xff] (!%p252_p9)  ;;  %v321_v14 = vld [vmem:[%s1475_s2 + $0x30] sm:$0xff] (!%p252_p9)  ;;  %v322_v19 = vld [vmem:[%s1475_s2 + $0x38] sm:$0xff] (!%p252_p9)  ;;  %s284_s23 = sand.u32 (!%p252_p9), 1, %s1186_s27  }
  0x13   : > { %357 = vperm.xlu0 (!%p252_p9), %1100, %v315_v3   ;;  %367 = vperm.xlu1 (!%p252_p9), %1101, %v317_v4   ;;  %v681_v17 = vld [vmem:[%s1477_s4] sm:$0xff] (!%p252_p9)  ;;  %v683_v20 = vld [vmem:[%s1477_s4 + $0x10] sm:$0xff] (!%p252_p9)  ;;  %v682_v23 = vld [vmem:[%s1477_s4 + $0x8] sm:$0xff] (!%p252_p9)  ;;  %s987_s24 = sshll.u32 (!%p252_p9), %s284_s23, 1  ;;  %s1419_s9 = scalar_lea.sflag (!%p252_p9), [#allocation4], %s284_s23 }
  0x14   : > { %v807_v24 = vld [vmem:[%s1478_s5] sm:$0xff] (!%p252_p9)  ;;  %v684_v26 = vld [vmem:[%s1477_s4 + $0x18] sm:$0xff] (!%p252_p9)  ;;  %v809_v27 = vld [vmem:[%s1478_s5 + $0x10] sm:$0xff] (!%p252_p9)  ;;  %s286_s30 = scalar_lea.vmem (!%p252_p9), [#allocation3], %s987_s24 }
  0x15   : > { %v808_v30 = vld [vmem:[%s1478_s5 + $0x8] sm:$0xff] (!%p252_p9)  ;;  %v811_v31 = vld [vmem:[#allocation2] sm:$0x1] (!%p252_p9)  ;;  %v810_v33 = vld [vmem:[%s1478_s5 + $0x18] sm:$0xff] (!%p252_p9) }
  0x16   : > { %v1119_v44 = vld [vmem:[%s1474_s1 + $0x8] sm:$0xff] (!%p252_p9)   ;;  %v1120_v45 = vld [vmem:[%s1474_s1 + $0x10] sm:$0xff] (!%p252_p9)   ;;  %v1121_v46 = vld [vmem:[%s1474_s1 + $0x18] sm:$0xff] (!%p252_p9)  }
  0x17   : > { %362 = vperm.xlu0 (!%p252_p9), %1100, %v316_v5   ;;  %372 = vperm.xlu1 (!%p252_p9), %1101, %v318_v6  }
  0x18   : > { %s293_s17 = scalar_select %p292_p10, %s1291_s14, 37 }
  0x19   : > { %s1021_s10 = sshll.u32 (%p1280_p5), %s1263_s6, 1 }
  0x1a   : > { %s989_s20 = sshll.u32 %s293_s17, 2  ;;  %s913_s15 = ssub.s32 (%p1280_p5), 3, %s1021_s10 }
  0x1b   : > { %s1314_s25 = scalar_lea.vmem %s1473_s0, %s989_s20  ;;  %377 = vperm.xlu0 %1100, %v319_v11   ;;  %382 = vperm.xlu1 %1101, %v320_v12   ;;  %p914_p11 = scmp.lt.s32.totalorder (%p1280_p5), %s913_s15, 2 }
  0x1c   : > { %v1102_v7 = vld [vmem:[%s1314_s25 + $0x40] sm:$0xff]   ;;  %v1104_v9 = vld [vmem:[%s1314_s25 + $0x48] sm:$0xff]   ;;  %v1106_v16 = vld [vmem:[%s1314_s25 + $0x50] sm:$0xff]  }
  0x1d   : > { %v1103_v8 = vld [vmem:[%s1314_s25] sm:$0xff]   ;;  %1052 = vmatprep.subr.msk.bf16.mxu0 %vm495_vm0, %v1102_v7  ;;  %v1105_v13 = vld [vmem:[%s1314_s25 + $0x8] sm:$0xff]   ;;  %v1107_v18 = vld [vmem:[%s1314_s25 + $0x10] sm:$0xff]  }
  0x1e   : > { %v509_v10 = vsel %vm495_vm0, %v1103_v8, 0  ;;  %v512_v15 = vsel %vm495_vm0, %v1105_v13, 0  ;;  %v515_v21 = vsel %vm495_vm0, %v1107_v18, 0  ;;  %v1108_v22 = vld [vmem:[%s1314_s25 + $0x58] sm:$0xff]   ;;  %v1110_v29 = vld [vmem:[%s1314_s25 + $0x60] sm:$0xff]   ;;  %v1112_v35 = vld [vmem:[%s1314_s25 + $0x68] sm:$0xff]  }
  0x1f   : > { %1029 = vmatpush3.bf16.xpose.msra.mxu0 %v509_v10  ;;  %387 = vperm.xlu0 %1100, %v321_v14   ;;  %v1109_v25 = vld [vmem:[%s1314_s25 + $0x18] sm:$0xff]   ;;  %v1111_v32 = vld [vmem:[%s1314_s25 + $0x20] sm:$0xff]   ;;  %v1113_v36 = vld [vmem:[%s1314_s25 + $0x28] sm:$0xff]  }
  0x20   : > { %1053 = vmatprep.subr.msk.bf16.mxu0 %vm495_vm0, %v1104_v9  ;;  %392 = vperm.xlu1 %1101, %v322_v19   ;;  %v518_v28 = vsel %vm495_vm0, %v1109_v25, 0  ;;  %v521_v34 = vsel %vm495_vm0, %v1111_v32, 0  ;;  %v524_v37 = vsel %vm495_vm0, %v1113_v36, 0  ;;  %v1114_v38 = vld [vmem:[%s1314_s25 + $0x70] sm:$0xff]   ;;  %v1116_v41 = vld [vmem:[%s1314_s25 + $0x78] sm:$0xff]  }
  0x21   : > { %v1115_v39 = vld [vmem:[%s1314_s25 + $0x30] sm:$0xff]   ;;  %v1117_v42 = vld [vmem:[%s1314_s25 + $0x38] sm:$0xff]  }
  0x22   : > { %v527_v40 = vsel %vm495_vm0, %v1115_v39, 0  ;;  %v530_v43 = vsel %vm495_vm0, %v1117_v42, 0 }
  0x23   : > { %695 = vperm.xlu0 %1100, %v681_v17  }
  0x24   : > { %700 = vperm.xlu1 %1101, %v682_v23  }
  0x27   : > { %1031 = vmatpush3.bf16.xpose.msra.mxu0 %v512_v15  ;;  %705 = vperm.xlu0 %1100, %v683_v20  }
  0x28   : > { %1054 = vmatprep.subr.msk.bf16.mxu0 %vm495_vm0, %v1106_v16  ;;  %710 = vperm.xlu1 %1101, %v684_v26  }
  0x2b   : > { %814 = vperm.xlu0 %1100, %v807_v24  }
  0x2c   : > { %819 = vperm.xlu1 %1101, %v808_v30  }
  0x2f   : > { %1033 = vmatpush3.bf16.xpose.msra.mxu0 %v515_v21  ;;  %824 = vperm.xlu0 %1100, %v809_v27  }
  0x30   : > { %1055 = vmatprep.subr.msk.bf16.mxu0 %vm495_vm0, %v1108_v22  ;;  %829 = vperm.xlu1 %1101, %v810_v33  }
  0x33   : > { %860 = vperm.xlu0 %1100, %v811_v31  }
  0x37   : > { %1035 = vmatpush3.bf16.xpose.msra.mxu0 %v518_v28 }
  0x38   : > { %1056 = vmatprep.subr.msk.bf16.mxu0 %vm495_vm0, %v1110_v29 }
  0x3f   : > { %1037 = vmatpush3.bf16.xpose.msra.mxu0 %v521_v34 }
  0x40   : > { %1057 = vmatprep.subr.msk.bf16.mxu0 %vm495_vm0, %v1112_v35 }
  0x47   : > { %1039 = vmatpush3.bf16.xpose.msra.mxu0 %v524_v37 }
  0x48   : > { %1058 = vmatprep.subr.msk.bf16.mxu0 %vm495_vm0, %v1114_v38 }
  0x4f   : > { %1041 = vmatpush3.bf16.xpose.msra.mxu0 %v527_v40 }
  0x50   : > { %1059 = vmatprep.subr.msk.bf16.mxu0 %vm495_vm0, %v1116_v41 }
  0x57   : > { %1043 = vmatpush3.bf16.xpose.msra.mxu0 %v530_v43 }
  0x5e   : > { %1045 = vmatmul.mubr.msk.bf16.vlgmr.msra.gmra.mrb[0].mxu0 %vm495_vm0, %v1297_v1 }
  0x5f   : > { %1046 = vmatprep.mubr.msk.bf16.mxu0 %vm495_vm0, %v1119_v44 }
  0x66   : > { %1047 = vmatmul.mubr.msk.bf16.gmra.mrb[4].mxu0 %vm495_vm0, %v1119_v44 }
  0x67   : > { %1048 = vmatprep.mubr.msk.bf16.mxu0 %vm495_vm0, %v1120_v45 }
  0x6e   : > { %1049 = vmatmul.mubr.msk.bf16.gmra.mrb[8].mxu0 %vm495_vm0, %v1120_v45 }
  0x6f   : > { %1050 = vmatprep.mubr.msk.bf16.mxu0 %vm495_vm0, %v1121_v46 }
  0x76   : > { %1051 = vmatmul.mubr.msk.bf16.gmra.mrb[12].mxu0 %vm495_vm0, %v1121_v46 }
  0x92   : > { %v358_v47 = vpop.permute.xlu0 %357  ;;  %v368_v57 = vpop.permute.xlu1 %367 }
  0x96   : > { %v363_v51 = vpop.permute.xlu0 %362  ;;  %v373_v8 = vpop.permute.xlu1 %372 }
  0x9a   : > { %v378_v20 = vpop.permute.xlu0 %377  ;;  %v383_v28 = vpop.permute.xlu1 %382 }
  0x9e   : > { %v388_v40 = vpop.permute.xlu0 %387 }
 0x131   : > { %v590_v48 = vpop.f32.mrb[0].mxu0 }
 0x132   : > { %v591_v49 = vadd.f32 %v590_v48, %v358_v47  ;;  %v592_v50 = vpop.f32.mrb[1].mxu0  ;;  %v393_v48 = vpop.permute.xlu1 %392 }
 0x133   : > { %v593_v52 = vadd.f32 %v592_v50, %v358_v47  ;;  %v594_v53 = vpop.f32.mrb[2].mxu0 }
 0x134   : > { %v645_v54 = vmul.f32 0.01, %v591_v49  ;;  %v595_v55 = vadd.f32 %v594_v53, %v363_v51  ;;  %v596_v56 = vpop.f32.mrb[3].mxu0  ;;  %vm629_vm1 = vcmp.gt.f32.partialorder %v591_v49, 0.0 }
 0x135   : > { %v646_v58 = vmul.f32 0.01, %v593_v52  ;;  %v597_v59 = vadd.f32 %v596_v56, %v363_v51  ;;  %vm630_vm2 = vcmp.gt.f32.partialorder %v593_v52, 0.0 }
 0x136   : > { %v647_v60 = vmul.f32 0.01, %v595_v55  ;;  %vm631_vm3 = vcmp.gt.f32.partialorder %v595_v55, 0.0  ;;  %v661_v62 = vsel %vm629_vm1, %v591_v49, %v645_v54  ;;  %vm723_vm1 = vcmask 523264  }
 0x137   : > { %v648_v61 = vmul.f32 0.01, %v597_v59  ;;  %vm632_vm4 = vcmp.gt.f32.partialorder %v597_v59, 0.0  ;;  %v662_v1 = vsel %vm630_vm2, %v593_v52, %v646_v58 }
 0x138   : > { %v663_v63 = vsel %vm631_vm3, %v595_v55, %v647_v60 }
 0x139   : > { %v600_v0 = vpop.f32.mrb[4].mxu0  ;;  %v664_v3 = vsel %vm632_vm4, %v597_v59, %v648_v61  ;;  %v685_v4 = vpack.c.bf16 %v663_v63, %v661_v62 }
 0x13a   : > { %v601_v5 = vadd.f32 %v600_v0, %v368_v57  ;;  %v602_v6 = vpop.f32.mrb[5].mxu0  ;;  %v686_v7 = vpack.c.bf16 %v664_v3, %v662_v1  ;;  %v1122_v0 = vld [vmem:[%s1476_s3] sm:$0xff]   ;;  %v1123_v1 = vld [vmem:[%s1476_s3 + $0x8] sm:$0xff]   ;;  %v696_v3 = vpop.permute.xlu0 %695 }
 0x13b   : > { %v603_v9 = vadd.f32 %v602_v6, %v368_v57  ;;  %v604_v10 = vpop.f32.mrb[6].mxu0 }
 0x13c   : > { %v649_v11 = vmul.f32 0.01, %v601_v5  ;;  %v605_v12 = vadd.f32 %v604_v10, %v373_v8  ;;  %v606_v13 = vpop.f32.mrb[7].mxu0  ;;  %730 = vmatprep.subr.bf16.mxu1 %v686_v7  ;;  %vm633_vm5 = vcmp.gt.f32.partialorder %v601_v5, 0.0 }
 0x13d   : > { %v650_v14 = vmul.f32 0.01, %v603_v9  ;;  %v607_v15 = vadd.f32 %v606_v13, %v373_v8  ;;  %731 = vmatpush1.bf16.msra.mxu1 %v685_v4  ;;  %vm634_vm6 = vcmp.gt.f32.partialorder %v603_v9, 0.0  ;;  %v701_v4 = vpop.permute.xlu1 %700 }
 0x13e   : > { %vm635_vm7 = vcmp.gt.f32.partialorder %v605_v12, 0.0  ;;  %v651_v16 = vmul.f32 0.01, %v605_v12  ;;  %v665_v18 = vsel %vm633_vm5, %v601_v5, %v649_v11  ;;  %v706_v5 = vpop.permute.xlu0 %705 }
 0x13f   : > { %vm636_vm8 = vcmp.gt.f32.partialorder %v607_v15, 0.0  ;;  %v652_v17 = vmul.f32 0.01, %v607_v15  ;;  %v666_v22 = vsel %vm634_vm6, %v603_v9, %v650_v14 }
 0x140   : > { %v667_v19 = vsel %vm635_vm7, %v605_v12, %v651_v16 }
 0x141   : > { %v610_v21 = vpop.f32.mrb[8].mxu0  ;;  %v668_v23 = vsel %vm636_vm8, %v607_v15, %v652_v17  ;;  %v687_v24 = vpack.c.bf16 %v667_v19, %v665_v18  ;;  %v711_v7 = vpop.permute.xlu1 %710 }
 0x142   : > { %v611_v25 = vadd.f32 %v610_v21, %v378_v20  ;;  %v612_v26 = vpop.f32.mrb[9].mxu0  ;;  %v688_v27 = vpack.c.bf16 %v668_v23, %v666_v22 }
 0x143   : > { %v613_v29 = vadd.f32 %v612_v26, %v378_v20  ;;  %v614_v30 = vpop.f32.mrb[10].mxu0  ;;  %v815_v20 = vpop.permute.xlu0 %814 }
 0x144   : > { %v653_v31 = vmul.f32 0.01, %v611_v25  ;;  %v615_v32 = vadd.f32 %v614_v30, %v383_v28  ;;  %v616_v33 = vpop.f32.mrb[11].mxu0  ;;  %732 = vmatprep.subr.bf16.mxu1 %v688_v27  ;;  %vm637_vm9 = vcmp.gt.f32.partialorder %v611_v25, 0.0 }
 0x145   : > { %v654_v34 = vmul.f32 0.01, %v613_v29  ;;  %v617_v35 = vadd.f32 %v616_v33, %v383_v28  ;;  %733 = vmatpush1.bf16.msra.mxu1 %v687_v24  ;;  %vm638_vm10 = vcmp.gt.f32.partialorder %v613_v29, 0.0  ;;  %v820_v21 = vpop.permute.xlu1 %819 }
 0x146   : > { %vm639_vm11 = vcmp.gt.f32.partialorder %v615_v32, 0.0  ;;  %v655_v36 = vmul.f32 0.01, %v615_v32  ;;  %v669_v38 = vsel %vm637_vm9, %v611_v25, %v653_v31 }
 0x147   : > { %vm640_vm12 = vcmp.gt.f32.partialorder %v617_v35, 0.0  ;;  %v656_v37 = vmul.f32 0.01, %v617_v35  ;;  %v670_v42 = vsel %vm638_vm10, %v613_v29, %v654_v34 }
 0x148   : > { %v671_v39 = vsel %vm639_vm11, %v615_v32, %v655_v36 }
 0x149   : > { %v620_v41 = vpop.f32.mrb[12].mxu0  ;;  %v672_v43 = vsel %vm640_vm12, %v617_v35, %v656_v37  ;;  %v689_v44 = vpack.c.bf16 %v671_v39, %v669_v38 }
 0x14a   : > { %v621_v45 = vadd.f32 %v620_v41, %v388_v40  ;;  %v622_v46 = vpop.f32.mrb[13].mxu0  ;;  %v690_v47 = vpack.c.bf16 %v672_v43, %v670_v42 }
 0x14b   : > { %v623_v49 = vadd.f32 %v622_v46, %v388_v40  ;;  %v624_v50 = vpop.f32.mrb[14].mxu0  ;;  %v825_v40 = vpop.permute.xlu0 %824 }
 0x14c   : > { %v657_v51 = vmul.f32 0.01, %v621_v45  ;;  %v625_v52 = vadd.f32 %v624_v50, %v393_v48  ;;  %v626_v53 = vpop.f32.mrb[15].mxu0  ;;  %734 = vmatprep.subr.bf16.mxu1 %v690_v47  ;;  %vm641_vm13 = vcmp.gt.f32.partialorder %v621_v45, 0.0  ;;  %v830_v46 = vpop.permute.xlu1 %829 }
 0x14d   : > { %v658_v54 = vmul.f32 0.01, %v623_v49  ;;  %v627_v55 = vadd.f32 %v626_v53, %v393_v48  ;;  %735 = vmatpush1.bf16.msra.mxu1 %v689_v44  ;;  %vm642_vm14 = vcmp.gt.f32.partialorder %v623_v49, 0.0 }
 0x14e   : > { %vm643_vm15 = vcmp.gt.f32.partialorder %v625_v52, 0.0  ;;  %v659_v56 = vmul.f32 0.01, %v625_v52  ;;  %v673_v58 = vsel %vm641_vm13, %v621_v45, %v657_v51 }
 0x14f   : > { %vm644_vm0 = vcmp.gt.f32.partialorder %v627_v55, 0.0  ;;  %v660_v57 = vmul.f32 0.01, %v627_v55  ;;  %v674_v60 = vsel %vm642_vm14, %v623_v49, %v658_v54  ;;  %v863_v54 = vlaneseq }
 0x150   : > { %v675_v59 = vsel %vm643_vm15, %v625_v52, %v659_v56 }
 0x151   : > { %v676_v61 = vsel %vm644_vm0, %v627_v55, %v660_v57  ;;  %v691_v62 = vpack.c.bf16 %v675_v59, %v673_v58  ;;  %v864_v59 = vshrl.u32 %v863_v54, 7  ;;  %vm901_vm10 = vcmp.lt.s32.totalorder %v863_v54, 256 }
 0x152   : > { %v692_v63 = vpack.c.bf16 %v676_v61, %v674_v60 }
 0x154   : > { %736 = vmatprep.subr.bf16.mxu1 %v692_v63 }
 0x155   : > { %737 = vmatpush1.bf16.msra.mxu1 %v691_v62 }
 0x158   : > { %1016 = vmatmul.mubr.msk.bf16.vlgmr.msra.gmra.mrb[0].mxu1 %vm723_vm1, %v1122_v0  ;;  %v865_v0 = vsub.s32 0, %v864_v59 }
 0x159   : > { %772 = vmatprep.mubr.bf16.mxu1 %v1196_v2 }
 0x160   : > { %1017 = vmatmul.mubr.msk.bf16.gmra.mrb[4].mxu1 %vm723_vm1, %v1123_v1 }
 0x22b   : > { %v764_v6 = vpop.f32.mrb[0].mxu1 }
 0x22c   : > { %v765_v8 = vadd.f32 %v764_v6, %v696_v3  ;;  %v766_v9 = vpop.f32.mrb[1].mxu1 }
 0x22d   : > { %v767_v10 = vadd.f32 %v766_v9, %v696_v3  ;;  %v768_v11 = vpop.f32.mrb[2].mxu1  ;;  %v861_v3 = vpop.permute.xlu0 %860 }
 0x22e   : > { %vm783_vm2 = vcmp.gt.f32.partialorder %v765_v8, 0.0  ;;  %v791_v12 = vmul.f32 0.01, %v765_v8  ;;  %v769_v13 = vadd.f32 %v768_v11, %v701_v4  ;;  %v770_v14 = vpop.f32.mrb[3].mxu1 }
 0x22f   : > { %vm784_vm3 = vcmp.gt.f32.partialorder %v767_v10, 0.0  ;;  %v792_v2 = vmul.f32 0.01, %v767_v10  ;;  %v771_v15 = vadd.f32 %v770_v14, %v701_v4 }
 0x230   : > { %v799_v16 = vsel %vm783_vm2, %v765_v8, %v791_v12  ;;  %vm785_vm4 = vcmp.gt.f32.partialorder %v769_v13, 0.0  ;;  %v793_v17 = vmul.f32 0.01, %v769_v13 }
 0x231   : > { %v800_v18 = vsel %vm784_vm3, %v767_v10, %v792_v2  ;;  %vm786_vm5 = vcmp.gt.f32.partialorder %v771_v15, 0.0  ;;  %v794_v19 = vmul.f32 0.01, %v771_v15  ;;  %v832_v23 = vmul.f32 %v815_v20, %v799_v16 }
 0x232   : > { %v801_v22 = vsel %vm785_vm4, %v769_v13, %v793_v17  ;;  %v833_v27 = vmul.f32 %v815_v20, %v800_v18  ;;  %v1197_v17 = vmov 1966171168  }
 0x233   : > { %v834_v24 = vmul.f32 %v820_v21, %v801_v22  ;;  %v802_v25 = vsel %vm786_vm5, %v771_v15, %v794_v19  ;;  %v774_v26 = vpop.f32.mrb[4].mxu1  ;;  %v885_v18 = vunpack.c.l.s4 %v1197_v17 }
 0x234   : > { %v835_v28 = vmul.f32 %v820_v21, %v802_v25  ;;  %v775_v29 = vadd.f32 %v774_v26, %v706_v5  ;;  %v776_v30 = vpop.f32.mrb[5].mxu1 }
 0x235   : > { %v840_v31 = vadd.f32 %v834_v24, %v832_v23  ;;  %v777_v32 = vadd.f32 %v776_v30, %v706_v5  ;;  %v778_v33 = vpop.f32.mrb[6].mxu1  ;;  %v886_v19 = vunpack.c.0.s8 %v885_v18 }
 0x236   : > { %v849_v34 = vadd.f32 %v835_v28, %v833_v27  ;;  %vm787_vm6 = vcmp.gt.f32.partialorder %v775_v29, 0.0  ;;  %v795_v35 = vmul.f32 0.01, %v775_v29  ;;  %v779_v36 = vadd.f32 %v778_v33, %v711_v7  ;;  %v780_v37 = vpop.f32.mrb[7].mxu1 }
 0x237   : > { %vm788_vm7 = vcmp.gt.f32.partialorder %v777_v32, 0.0  ;;  %v796_v38 = vmul.f32 0.01, %v777_v32  ;;  %v781_v39 = vadd.f32 %v780_v37, %v711_v7  ;;  %v866_v7 = vrot.slane %v861_v3, %v865_v0 }
 0x238   : > { %v803_v41 = vsel %vm787_vm6, %v775_v29, %v795_v35  ;;  %vm789_vm8 = vcmp.gt.f32.partialorder %v779_v36, 0.0  ;;  %v797_v42 = vmul.f32 0.01, %v779_v36  ;;  %v889_v21 = vsub.s32 %v886_v19, %v864_v59 }
 0x239   : > { %v836_v43 = vmul.f32 %v825_v40, %v803_v41  ;;  %v804_v44 = vsel %vm788_vm7, %v777_v32, %v796_v38  ;;  %vm790_vm9 = vcmp.gt.f32.partialorder %v781_v39, 0.0  ;;  %v798_v45 = vmul.f32 0.01, %v781_v39 }
 0x23a   : > { %v837_v47 = vmul.f32 %v825_v40, %v804_v44  ;;  %v805_v48 = vsel %vm789_vm8, %v779_v36, %v797_v42 }
 0x23b   : > { %v841_v49 = vadd.f32 %v840_v31, %v836_v43  ;;  %v838_v50 = vmul.f32 %v830_v46, %v805_v48  ;;  %v806_v51 = vsel %vm790_vm9, %v781_v39, %v798_v45 }
 0x23c   : > { %v850_v52 = vadd.f32 %v849_v34, %v837_v47  ;;  %v839_v53 = vmul.f32 %v830_v46, %v806_v51 }
 0x23d   : > { %v842_v55 = vadd.f32 %v841_v49, %v838_v50 }
 0x23e   : > { %v851_v56 = vadd.f32 %v850_v52, %v839_v53 }
 0x23f   : > { %v843_v57 = vrot.slane %v842_v55, 4 }
 0x240   : > { %v852_v58 = vrot.slane %v851_v56, 4 }
 0x241   : > { %v844_v60 = vadd.f32 %v843_v57, %v842_v55 }
 0x242   : > { %v853_v61 = vadd.f32 %v852_v58, %v851_v56 }
 0x243   : > { %v845_v62 = vrot.slane %v844_v60, 2 }
 0x244   : > { %v854_v63 = vrot.slane %v853_v61, 2 }
 0x245   : > { %v846_v1 = vadd.f32 %v845_v62, %v844_v60 }
 0x246   : > { %v855_v4 = vadd.f32 %v854_v63, %v853_v61 }
 0x247   : > { %v847_v5 = vrot.slane %v846_v1, 1 }
 0x248   : > { %v856_v6 = vrot.slane %v855_v4, 1 }
 0x249   : > { %v848_v8 = vadd.f32 %v847_v5, %v846_v1 }
 0x24a   : > { %v857_v9 = vadd.f32 %v856_v6, %v855_v4 }
 0x24b   : > { %v867_v10 = vadd.f32 %v866_v7, %v848_v8 }
 0x24c   : > { %v868_v11 = vadd.f32 %v866_v7, %v857_v9 }
 0x24d   : > { %v1018_v12 = vmul.f32 -1.442695, %v867_v10 }
 0x24e   : > { %v1019_v13 = vmul.f32 -1.442695, %v868_v11 }
 0x24f   : > { %1124 = vpow2.f32 %v1018_v12 }
 0x250   : > { %1126 = vpow2.f32 %v1019_v13 }
 0x259   : > { %v1125_v14 = vpop.eup %1124 }
 0x25a   : > { %v1127_v2 = vpop.eup %1126  ;;  %v875_v15 = vadd.f32 1.0, %v1125_v14 }
 0x25b   : > { %v876_v16 = vadd.f32 1.0, %v1127_v2 }
 0x25c   : > { %1128 = vrcp.f32 %v875_v15 }
 0x25d   : > { %1130 = vrcp.f32 %v876_v16 }
 0x266   : > { %v1129_v20 = vpop.eup %1128 }
 0x267   : > { %v1131_v22 = vpop.eup %1130 }
 0x268   : > { %v883_v23 = vcombine.low %v1129_v20, %v1131_v22  ;;  %911 = sbr.rel (!%p1280_p5) target bundleno = 650 (0x28a), region = 52 }
 0x26a   : > { %v890_v24 = vrot.slane %v883_v23, %v889_v21 }
 0x26c   : > { %v897_v25 = vrot.slane %v890_v24, %v889_v21 }
 0x26e   : > { %903 = vst.msk [vmem:[%s286_s30] sm:$0x3] %vm901_vm10, %v897_v25 }
 0x26f   : > { %s1488_s15 = smov (!%p914_p11, %s913_s15), 2 }
 0x270   : > { %s1424_s16 = sshll.u32 %s1488_s15, 4 }
 0x271   : > { %s918_s17 = ssub.s32 32, %s1424_s16 }
 0x272   : > { %919 = vsyncadd %s1419_s9, %s918_s17  ;;  %p1023_p12 = scmp.ne.s32.totalorder %s1424_s16, 0  ;;  %s1433_s12 = scalar_lea.hbm %s1480_s7, %s1291_s14 }
 0x273   : > { %s924_s19 = sshll.u32 %s286_s30, 4  ;;  %s1198_s20 = smov [#allocation3]   ;;  %s925_s19 = int_to_ptr.vmem [resolvable:$true] %s924_s19 }
 0x274   : > { %s1132_s6 = scalar_lea.vmem %s925_s19, %s1424_s16  ;;  %s1136_s21 = sshll.u32 %s1198_s20, 4  ;;  %s1137_s21 = int_to_ptr.vmem [resolvable:$false] %s1136_s21 }
 0x275   : > { %p1133_p13 = scmp.ne.s32.totalorder %s925_s19, %s1132_s6  ;;  %s1138_s22 = scalar_lea.vmem %s1137_s21, 64 }
 0x276   : > { %p1139_p2 = scmp.lt.s32.totalorder %s925_s19, %s1137_s21  ;;  %p1140_p3 = scmp.lt.s32.totalorder %s1138_s22, %s1132_s6 }
 0x277   : > { %p1134_p0 = pnand %p1133_p13, %p1023_p12 }
 0x278   : > { %p1141_p4 = por %p1140_p3, %p1139_p2 }
 0x279   : > { %p1135_p1 = pneg %p1134_p0 }
 0x27b   : > { %p1142_p5 = pnand %p1141_p4, %p1135_p1 }
 0x27d   : > { %1145 = shalt.err (!%p1142_p5)
}
 0x27e   : > { %s1146_s14 = scalar_lea.hbm %s1433_s12, %s1424_s16  ;;  %s1150_s30 = scalar_lea.hbm %s1480_s7, 48 }
 0x27f   : > { %p1147_p7 = scmp.ne.s32.totalorder %s1433_s12, %s1146_s14  ;;  %p1151_p10 = scmp.lt.u32.totalorder %s1433_s12, %s1480_s7 }
 0x280   : > { %p1152_p11 = scmp.lt.u32.totalorder %s1150_s30, %s1146_s14  ;;  %p1154_p0 = scmp.lt.u32.totalorder %s1146_s14, %s1433_s12 }
 0x281   : > { %p1148_p8 = pnand %p1147_p7, %p1023_p12 }
 0x282   : > { %p1153_p13 = por %p1152_p11, %p1151_p10 }
 0x283   : > { %p1149_p9 = pneg %p1148_p8 }
 0x284   : > { %p1155_p1 = por %p1154_p0, %p1153_p13 }
 0x286   : > { %p1156_p2 = pnand %p1155_p1, %p1149_p9 }
 0x288   : > { %1159 = shalt.err (!%p1156_p2)
}
 0x289   : > { %927 = dma.vmem_to_hbm [thread:$0]  (%p1023_p12), %s925_s19, %s1424_s16, %s1433_s12, %s1419_s9  }
 0x28a PF: > { %p1065_p3 = scmp.ge.s32.totalorder %s1194_s29, 2  ;;  %s936_s17 = sand.u32 1, %s1182_s26  }
 0x28b   : > { %s937_s25 = scalar_lea.sflag [#allocation4], %s936_s17 }
 0x28c   : > { %p1062_p4 = pnand %p1065_p3, %p1284_p6 }
 0x28e   : > { %1177 = dma.done.wait (!%p1062_p4), %s937_s25, 32  }
 0x28f   : > { %1179 = vsyncadd (!%p1062_p4), %s937_s25, 4294967264  ;;  %p19_p5 = scmp.ge.s32.totalorder %s1267_s8, 4   ;;  %s1483_s26 = smov %s1186_s27 }
 0x290   : > { %s1484_s27 = smov %s1190_s28  ;;  %s1485_s28 = smov %s1278_s11 }
 0x291   : > { %s1486_s29 = smov %s1267_s8  ;;  %21 = sbr.rel (!%p19_p5) target bundleno = 6 (0x6), region = 83 }
 0x298   :  { %942 = vsyncpa [#allocation4], 1 }
 0x299   :  { %944 = vsyncpa [#allocation4 + $0x1], 1 }

</bundles_post_ra>
